<compile_context>
chip_gen: v5e
topology: v5e:2x2
jax: 0.10.0
libtpu: 0.0.40
codegen_flags: <defaults>
</compile_context>

<pallas_src>
import jax
import jax.numpy as jnp
from jax import lax
from jax.experimental import pallas as pl
from jax.experimental.pallas import tpu as pltpu

# dot_general dimension numbers for  a @ b.T  (contract last dim of both).
_TRANS_B = (((1,), (1,)), ((), ()))


def _seq_attn_match_kernel(x_ref, y_ref, w_ref, b_ref, o_ref):
    # x_ref: [TL1, H]   (batch dim squeezed out by BlockSpec)
    # y_ref: [L2,  H]
    # w_ref: [H, H]     nn.Linear(H, H).weight  (out_features x in_features)
    # b_ref: [1, H]     nn.Linear(H, H).bias (reshaped)
    # o_ref: [TL1, H]
    w = w_ref[...]
    b = b_ref[...]

    # relu(x @ W^T + b), relu(y @ W^T + b)  -- MXU matmuls, f32 accumulation.
    x_proj = jnp.maximum(
        lax.dot_general(x_ref[...], w, _TRANS_B,
                        preferred_element_type=jnp.float32) + b, 0.0)
    y_proj = jnp.maximum(
        lax.dot_general(y_ref[...], w, _TRANS_B,
                        preferred_element_type=jnp.float32) + b, 0.0)

    # scores = x_proj @ y_proj^T  -> [TL1, L2]
    scores = lax.dot_general(x_proj, y_proj, _TRANS_B,
                             preferred_element_type=jnp.float32)

    # Numerically-stable softmax over L2 (rows are independent).
    m = jnp.max(scores, axis=-1, keepdims=True)
    e = jnp.exp(scores - m)
    alpha = e / jnp.sum(e, axis=-1, keepdims=True)

    # matched = alpha @ y  -> [TL1, H]
    o_ref[...] = jnp.dot(alpha, y_ref[...],
                         preferred_element_type=jnp.float32).astype(o_ref.dtype)


def seq_attn_match_no_mask(x, y, weight, bias, *, l1_tile=128):
    """x: [B, L1, H] f32, y: [B, L2, H] f32, weight: [H, H] f32, bias: [H] f32.

    Returns matched_seq: [B, L1, H] f32 (PyTorch SeqAttnMatchNoMask forward,
    identity=False, need_attention=False).
    """
    B, L1, H = x.shape
    _, L2, Hy = y.shape
    assert Hy == H and weight.shape == (H, H) and bias.shape == (H,)

    # Tile over L1: either the full L1 (small) or a multiple-of-8 tile.
    TL1 = L1 if L1 <= l1_tile else l1_tile
    grid = (B, pl.cdiv(L1, TL1))

    bias2 = bias.reshape(1, H)

    return pl.pallas_call(
        _seq_attn_match_kernel,
        out_shape=jax.ShapeDtypeStruct((B, L1, H), jnp.float32),
        grid=grid,
        in_specs=[
            # x: one batch element, one L1 tile per step (batch dim squeezed).
            pl.BlockSpec((None, TL1, H), lambda b, i: (b, i, 0)),
            # y: full L2 slab for this batch; constant across inner L1 steps
            # (Pallas skips re-DMA when the block index does not change).
            pl.BlockSpec((None, L2, H), lambda b, i: (b, 0, 0)),
            # Shared Linear weight/bias: constant index_map -> VMEM-resident.
            pl.BlockSpec((H, H), lambda b, i: (0, 0)),
            pl.BlockSpec((1, H), lambda b, i: (0, 0)),
        ],
        out_specs=pl.BlockSpec((None, TL1, H), lambda b, i: (b, i, 0)),
        compiler_params=pltpu.CompilerParams(
            dimension_semantics=("parallel", "parallel")),
    )(x, y, weight, bias2)


if __name__ == "__main__":
    key = jax.random.PRNGKey(0)
    kx, ky, kw, kb = jax.random.split(key, 4)

    # Small shapes: batch=2, len1=8, len2=16, hidden=128 (lane-dense last dim).
    B, L1, L2, H = 2, 8, 16, 128

    x = jax.random.normal(kx, (B, L1, H), dtype=jnp.float32)
    y = jax.random.normal(ky, (B, L2, H), dtype=jnp.float32)

    # nn.Linear(H, H) parameter shapes: weight [H, H], bias [H].
    bound = 1.0 / jnp.sqrt(H)
    weight = jax.random.uniform(kw, (H, H), minval=-bound, maxval=bound,
                                dtype=jnp.float32)
    bias = jax.random.uniform(kb, (H,), minval=-bound, maxval=bound,
                              dtype=jnp.float32)

    out = seq_attn_match_no_mask(x, y, weight, bias)
    out = jax.block_until_ready(out)

    # Pure-JAX reference.
    def ref(x, y, w, b):
        xp = jax.nn.relu(jnp.einsum("blh,oh->blo", x, w, precision="highest") + b)
        yp = jax.nn.relu(jnp.einsum("blh,oh->blo", y, w, precision="highest") + b)
        s = jnp.einsum("bqh,bkh->bqk", xp, yp, precision="highest")
        a = jax.nn.softmax(s, axis=-1)
        return jnp.einsum("bqk,bkh->bqh", a, y, precision="highest")

    out_ref = ref(x, y, weight, bias)

    assert out.shape == (B, L1, H)
    assert jnp.allclose(out, out_ref, atol=1e-3, rtol=1e-3), float(
        jnp.max(jnp.abs(out - out_ref)))
    print("KERNEL_OK")
</pallas_src>

<mosaic_0001>
module attributes {stable_mosaic.version = 11 : i64} {
  func.func @_seq_attn_match_kernel(%arg0: i32, %arg1: i32, %arg2: memref<1x8x128xf32, #tpu.memory_space<vmem>>, %arg3: memref<1x16x128xf32, #tpu.memory_space<vmem>>, %arg4: memref<128x128xf32, #tpu.memory_space<vmem>>, %arg5: memref<1x128xf32, #tpu.memory_space<vmem>>, %arg6: memref<1x8x128xf32, #tpu.memory_space<vmem>>) attributes {dimension_semantics = [#tpu.dimension_semantics<parallel>, #tpu.dimension_semantics<parallel>], iteration_bounds = array<i64: 2, 1>, scalar_prefetch = 0 : i64, scratch_operands = 0 : i64, tpu.core_type = #tpu.core_type<tc>, window_params = [{transform_indices = @transform_0, window_bounds = array<i64: 1, 8, 128>}, {transform_indices = @transform_1, window_bounds = array<i64: 1, 16, 128>}, {pipeline_mode = #tpu.pipeline_mode<synchronous>, transform_indices = @transform_2, window_bounds = array<i64: 128, 128>}, {pipeline_mode = #tpu.pipeline_mode<synchronous>, transform_indices = @transform_3, window_bounds = array<i64: 1, 128>}, {transform_indices = @transform_4, window_bounds = array<i64: 1, 8, 128>}]} {
    %c0 = arith.constant 0 : index
    %c0_0 = arith.constant 0 : index
    %0 = vector.load %arg4[%c0, %c0_0] : memref<128x128xf32, #tpu.memory_space<vmem>>, vector<128x128xf32>
    %c0_1 = arith.constant 0 : index
    %c0_2 = arith.constant 0 : index
    %1 = vector.load %arg5[%c0_1, %c0_2] : memref<1x128xf32, #tpu.memory_space<vmem>>, vector<1x128xf32>
    %c0_3 = arith.constant 0 : index
    %c0_4 = arith.constant 0 : index
    %c0_5 = arith.constant 0 : index
    %2 = vector.load %arg2[%c0_3, %c0_4, %c0_5] : memref<1x8x128xf32, #tpu.memory_space<vmem>>, vector<1x8x128xf32>
    %3 = vector.shape_cast %2 : vector<1x8x128xf32> to vector<8x128xf32>
    %cst = arith.constant dense<0.000000e+00> : vector<8x128xf32>
    %4 = tpu.matmul %3, %0, %cst {dimension_numbers = #tpu.dot_dimension_numbers<[1], [1], [0], [0], [0, 0, 1, 0], [], []>} : vector<8x128xf32>, vector<128x128xf32>, vector<8x128xf32> -> vector<8x128xf32>
    %5 = vector.broadcast %1 : vector<1x128xf32> to vector<8x128xf32>
    %6 = arith.addf %4, %5 : vector<8x128xf32>
    %cst_6 = arith.constant 0.000000e+00 : f32
    %7 = vector.broadcast %cst_6 : f32 to vector<8x128xf32>
    %8 = arith.maximumf %6, %7 : vector<8x128xf32>
    %c0_7 = arith.constant 0 : index
    %c0_8 = arith.constant 0 : index
    %c0_9 = arith.constant 0 : index
    %9 = vector.load %arg3[%c0_7, %c0_8, %c0_9] : memref<1x16x128xf32, #tpu.memory_space<vmem>>, vector<1x16x128xf32>
    %10 = vector.shape_cast %9 : vector<1x16x128xf32> to vector<16x128xf32>
    %cst_10 = arith.constant dense<0.000000e+00> : vector<16x128xf32>
    %11 = tpu.matmul %10, %0, %cst_10 {dimension_numbers = #tpu.dot_dimension_numbers<[1], [1], [0], [0], [0, 0, 1, 0], [], []>} : vector<16x128xf32>, vector<128x128xf32>, vector<16x128xf32> -> vector<16x128xf32>
    %12 = vector.broadcast %1 : vector<1x128xf32> to vector<16x128xf32>
    %13 = arith.addf %11, %12 : vector<16x128xf32>
    %cst_11 = arith.constant 0.000000e+00 : f32
    %14 = vector.broadcast %cst_11 : f32 to vector<16x128xf32>
    %15 = arith.maximumf %13, %14 : vector<16x128xf32>
    %cst_12 = arith.constant dense<0.000000e+00> : vector<8x16xf32>
    %16 = tpu.matmul %8, %15, %cst_12 {dimension_numbers = #tpu.dot_dimension_numbers<[1], [1], [0], [0], [0, 0, 1, 0], [], []>} : vector<8x128xf32>, vector<16x128xf32>, vector<8x16xf32> -> vector<8x16xf32>
    %cst_13 = arith.constant dense<0xFF800000> : vector<8xf32>
    %17 = vector.multi_reduction <maximumf>, %16, %cst_13 [1] : vector<8x16xf32> to vector<8xf32>
    %18 = vector.shape_cast %17 : vector<8xf32> to vector<8x1xf32>
    %19 = vector.broadcast %18 : vector<8x1xf32> to vector<8x16xf32>
    %20 = arith.subf %16, %19 : vector<8x16xf32>
    %21 = math.exp %20 : vector<8x16xf32>
    %cst_14 = arith.constant dense<0.000000e+00> : vector<8xf32>
    %22 = vector.multi_reduction <add>, %21, %cst_14 [1] : vector<8x16xf32> to vector<8xf32>
    %23 = vector.shape_cast %22 : vector<8xf32> to vector<8x1xf32>
    %24 = vector.broadcast %23 : vector<8x1xf32> to vector<8x16xf32>
    %25 = arith.divf %21, %24 : vector<8x16xf32>
    %c0_15 = arith.constant 0 : index
    %c0_16 = arith.constant 0 : index
    %c0_17 = arith.constant 0 : index
    %26 = vector.load %arg3[%c0_15, %c0_16, %c0_17] : memref<1x16x128xf32, #tpu.memory_space<vmem>>, vector<1x16x128xf32>
    %27 = vector.shape_cast %26 : vector<1x16x128xf32> to vector<16x128xf32>
    %cst_18 = arith.constant dense<0.000000e+00> : vector<8x128xf32>
    %28 = tpu.matmul %25, %27, %cst_18 {dimension_numbers = #tpu.dot_dimension_numbers<[1], [0], [0], [1], [0, 0, 1, 1], [], []>} : vector<8x16xf32>, vector<16x128xf32>, vector<8x128xf32> -> vector<8x128xf32>
    %c0_19 = arith.constant 0 : index
    %c0_20 = arith.constant 0 : index
    %c0_21 = arith.constant 0 : index
    %29 = vector.load %arg6[%c0_19, %c0_20, %c0_21] : memref<1x8x128xf32, #tpu.memory_space<vmem>>, vector<1x8x128xf32>
    %30 = vector.shape_cast %29 : vector<1x8x128xf32> to vector<8x128xf32>
    %31 = vector.shape_cast %28 : vector<8x128xf32> to vector<1x8x128xf32>
    tpu.vector_store %arg6[%c0_19, %c0_20, %c0_21], %31 {strides = array<i32>} : memref<1x8x128xf32, #tpu.memory_space<vmem>>, vector<1x8x128xf32>,
    return
  }
  func.func @transform_0(%arg0: i32, %arg1: i32) -> (i32, i32, i32) {
    %c0_i32 = arith.constant 0 : i32
    %c0_i32_0 = arith.constant 0 : i32
    return %arg0, %arg1, %c0_i32 : i32, i32, i32
  }
  func.func @transform_1(%arg0: i32, %arg1: i32) -> (i32, i32, i32) {
    %c0_i32 = arith.constant 0 : i32
    %c0_i32_0 = arith.constant 0 : i32
    %c0_i32_1 = arith.constant 0 : i32
    return %arg0, %c0_i32, %c0_i32_0 : i32, i32, i32
  }
  func.func @transform_2(%arg0: i32, %arg1: i32) -> (i32, i32) {
    %c0_i32 = arith.constant 0 : i32
    %c0_i32_0 = arith.constant 0 : i32
    %c0_i32_1 = arith.constant 0 : i32
    return %c0_i32, %c0_i32_0 : i32, i32
  }
  func.func @transform_3(%arg0: i32, %arg1: i32) -> (i32, i32) {
    %c0_i32 = arith.constant 0 : i32
    %c0_i32_0 = arith.constant 0 : i32
    %c0_i32_1 = arith.constant 0 : i32
    return %c0_i32, %c0_i32_0 : i32, i32
  }
  func.func @transform_4(%arg0: i32, %arg1: i32) -> (i32, i32, i32) {
    %c0_i32 = arith.constant 0 : i32
    %c0_i32_0 = arith.constant 0 : i32
    return %arg0, %arg1, %c0_i32 : i32, i32, i32
  }
}

</mosaic_0001>

<bundles_post_ra>
// kernel: tpu_custom_call.1
= control target key start
LH: loop header
LB: loop body
LE: loop exit
PB: predicated region body
PF: predicated region fallthrough
CT: control target
= control target key end

     0   :  { %s1050_s0 = inlined_call_operand.hbm [shape: f32[2,8,128], index: 0, kind: input, shape index: {}]   ;;  %s1051_s1 = inlined_call_operand.hbm [shape: f32[2,16,128], index: 1, kind: input, shape index: {}]   ;;  %s1052_s2 = inlined_call_operand.hbm [shape: f32[128,128], index: 2, kind: input, shape index: {}]   ;;  %s1053_s3 = inlined_call_operand.vmem [shape: f32[1,128], index: 3, kind: input, shape index: {}]   ;;  %s1054_s4 = inlined_call_operand.hbm [shape: f32[2,8,128], index: 4, kind: output, shape index: {}]  }
   0x1   :  { %1060 = sst [smem:[#allocation17_spill]] %s1052_s2 }
   0x2   :  { %9 = vsyncpa [#allocation3], 0 }
   0x3   :  { %11 = vsyncpa [#allocation3 + $0x1], 0 }
   0x4   :  { %12 = vsyncpa [#allocation6], 0 }
   0x5   :  { %14 = vsyncpa [#allocation6 + $0x1], 0 }
   0x6   :  { %15 = vsyncpa [#allocation4], 0 }
   0x7   :  { %17 = vsyncpa [#allocation4 + $0x1], 0  ;;  %s873_s15 = smov 0   ;;  %s875_s16 = smov 0  }
   0x8   :  { %s877_s17 = smov 0   ;;  %s879_s18 = smov 0  }
   0x9   :  { %s881_s19 = smov 0   ;;  %s883_s20 = smov 0  }
   0xa LB: > { %1061 = sst [smem:[#allocation13_spill]] %s831_s17  ;;  %s904_s21 = sadd.s32 4294967295, %s843_s20   ;;  %s843_s20 = sphi %s883_s20, %s23_s20   ;;  %s839_s19 = sphi %s881_s19, %s1080_s19   ;;  %s835_s18 = sphi %s879_s18, %s1079_s18   ;;  %s831_s17 = sphi %s877_s17, %s1075_s17   ;;  %s827_s16 = sphi %s875_s16, %s1078_s16   ;;  %s823_s15 = sphi %s873_s15, %s1077_s15  }
   0xb   : > { %p559_p0 = scmp.ge.s32.totalorder %s843_s20, 1  ;;  %p58_p1 = scmp.eq.s32.totalorder %s904_s21, 0 }
   0xc   : > { %p164_p2 = scmp.lt.s32.totalorder %s843_s20, 3  ;;  %s1062_s2 = sld [smem:[#allocation17_spill]] }
   0xd   : > { %s845_s26 = smov [#allocation7]   ;;  %p561_p6 = scmp.ge.s32.totalorder %s843_s20, 2 }
   0xe   : > { %p912_p3 = pnand %p559_p0, %p164_p2  ;;  %s177_s27 = sshll.u32 %s845_s26, 4  ;;  %s178_s27 = int_to_ptr.vmem [resolvable:$true] %s177_s27 }
   0xf   : > { %s1055_s28 = smov 128   ;;  %s1056_s29 = smov 8  }
  0x10   : > { %p588_p4 = pneg %p912_p3  ;;  %s558_s30 = sadd.s32 4294967294, %s843_s20  }
  0x11   : > { %s35_s5 = sadd.s32 1, %s839_s19  ;;  %s44_s6 = sadd.s32 1, %s831_s17 }
  0x12   : > { %s175_s24 = sshll.u32 %s1062_s2, 4  ;;  %p589_p5 = pnand %p588_p4, %p58_p1  ;;  %s176_s24 = int_to_ptr.hbm [resolvable:$true] %s175_s24 }
  0x13   : > { %p37_p7 = scmp.ge.s32.totalorder %s35_s5, 2  ;;  %p51_p8 = scmp.ne.s32.totalorder %s831_s17, %s827_s16 }
  0x14   : > { %591 = dma.hbm_to_vmem [thread:$0]  (!%p589_p5), %s176_s24, 2048, %s178_s27, [#allocation6], %s1055_s28, %s1055_s28, %s1056_s29  }
  0x15   : > { %p52_p9 = scmp.eq.s32.totalorder %s843_s20, 0  ;;  %p57_p10 = scmp.ne.s32.totalorder %s827_s16, %s823_s15 }
  0x16   : > { %s1082_s5 = smov (%p37_p7, %s35_s5), 0  ;;  %p151_p13 = scmp.eq.s32.totalorder %s904_s21, 1 }
  0x17   : > { %1064 = sst [smem:[#allocation14_spill]] %s1082_s5  ;;  %p934_p11 = por %p52_p9, %p51_p8 }
  0x18   : > { %p940_p12 = por %p58_p1, %p57_p10  ;;  %s39_s9 = ssub.s32 %s839_s19, %s1082_s5 }
  0x19   : > { %p42_p0 = scmp.eq.s32.totalorder %s39_s9, 0  ;;  %p157_p2 = scmp.eq.s32.totalorder %s558_s30, 1 }
  0x1a   : > { %p947_p4 = por %p151_p13, %p51_p8  ;;  %p604_p5 = scmp.lt.s32.totalorder %s843_s20, 2 }
  0x1b   : > { %s953_s11 = scalar_select %p42_p0, %s831_s17, %s44_s6  }
  0x1c   : > { %p955_p7 = por %p157_p2, %p57_p10  ;;  %s194_s13 = sand.u32 1, %s831_s17  }
  0x1d   : > { %1068 = sst [smem:[#allocation15_spill]] %s953_s11  ;;  %s562_s14 = sshll.u32 %s194_s13, 3 }
  0x1e   : > { %s1069_s12 = scalar_select %p955_p7, 1, 0 }
  0x1f   : > { %s563_s22 = sshll.u32 %s839_s19, 3  ;;  %s198_s27 = scalar_lea.vmem [#allocation2], %s562_s14 }
  0x20   : > { %1070 = sst [smem:[#allocation16_spill]] %s1069_s12  ;;  %s203_s26 = scalar_lea.hbm %s1050_s0, %s563_s22 }
  0x21   : > { %s207_s30 = sshll.u32 %s198_s27, 4  ;;  %s205_s9 = sshll.u32 %s203_s26, 4  ;;  %s208_s30 = int_to_ptr.vmem [resolvable:$true] %s207_s30  ;;  %s206_s9 = int_to_ptr.hbm [resolvable:$true] %s205_s9 }
  0x22   : > { %p593_p8 = pnand %p604_p5, %p934_p11  ;;  %s564_s6 = sshll.u32 %s194_s13, 4 }
  0x23   : > { %s577_s28 = sshll.u32 %s839_s19, 4  ;;  %s195_s29 = scalar_lea.sflag [#allocation3], %s194_s13 }
  0x24   : > { %595 = dma.hbm_to_vmem [thread:$0]  (!%p593_p8), %s206_s9, 128, %s208_s30, %s195_s29  }
  0x25   : > { %s218_s2 = scalar_lea.vmem [#allocation5], %s564_s6  ;;  %s214_s11 = sand.u32 1, %s843_s20  }
  0x26   : > { %s226_s5 = sshll.u32 %s218_s2, 4  ;;  %s223_s23 = scalar_lea.hbm %s1051_s1, %s577_s28  ;;  %s227_s5 = int_to_ptr.vmem [resolvable:$true] %s226_s5 }
  0x27   : > { %s224_s22 = sshll.u32 %s223_s23, 4  ;;  %s215_s14 = scalar_lea.sflag [#allocation6], %s214_s11  ;;  %s225_s22 = int_to_ptr.hbm [resolvable:$true] %s224_s22 }
  0x28   : > { %s1071_s24 = smov 8   ;;  %s1072_s26 = smov 128  }
  0x29   : > { %598 = dma.hbm_to_vmem [thread:$0]  (!%p593_p8), %s225_s22, 256, %s227_s5, %s215_s14, %s1072_s26, %s1072_s26, %s1071_s24  }
  0x2a   : > { %238 = sbr.rel (%p912_p3) target bundleno = 793 (0x319), region = 36  ;;  %s977_s29 = sand.u32 (!%p912_p3), 1, %s827_s16  }
  0x2b   : > { %s568_s2 = sshll.u32 (!%p912_p3), %s977_s29, 3  ;;  %s241_s17 = scalar_lea.sflag (!%p912_p3), [#allocation3], %s977_s29 }
  0x2c   : > { %s983_s28 = scalar_lea.vmem (!%p912_p3), [#allocation2], %s568_s2 }
  0x2f   : > { %806 = dma.done.wait (%p940_p12), %s241_s17, 128  }
  0x30   : > { %808 = vsyncadd (%p940_p12), %s241_s17, 4294967168  ;;  %s250_s25 = sand.u32 1, %s904_s21   ;;  %s569_s5 = sshll.u32 %s977_s29, 4 }
  0x31   : > { %s251_s7 = scalar_lea.sflag [#allocation6], %s250_s25  ;;  %s991_s11 = scalar_lea.vmem [#allocation5], %s569_s5 }
  0x32   : > { %810 = dma.done.wait (%p940_p12), %s251_s7, 256  }
  0x33   : > { %812 = vsyncadd (%p940_p12), %s251_s7, 4294967040 }
  0x34   : > { %814 = dma.done.wait (%p58_p1), [#allocation6], 2048  }
  0x35   : > { %816 = vsyncadd (%p58_p1), [#allocation6], 4294965248  ;;  %v305_v0 = vld [vmem:[#allocation7 + $0x78] sm:$0xff]  ;;  %v304_v1 = vld [vmem:[#allocation7 + $0x70] sm:$0xff]  ;;  %vm379_vm0 = vcmask 130048   ;;  %s574_s12 = sshll.u32 %s835_s18, 3 }
  0x36   : > { %334 = vmatpush.xpose.msra.mxu1 %v305_v0  ;;  %311 = vmatpush.xpose.msra.mxu0 %v305_v0  ;;  %v303_v2 = vld [vmem:[#allocation7 + $0x68] sm:$0xff]  ;;  %v302_v3 = vld [vmem:[#allocation7 + $0x60] sm:$0xff]  ;;  %v301_v4 = vld [vmem:[#allocation7 + $0x58] sm:$0xff]  ;;  %s440_s30 = scalar_lea.hbm %s1054_s4, %s574_s12  ;;  %s289_s9 = scalar_lea.vmem [#allocation8], %s568_s2 }
  0x37   : > { %v300_v5 = vld [vmem:[#allocation7 + $0x50] sm:$0xff]  ;;  %v299_v6 = vld [vmem:[#allocation7 + $0x48] sm:$0xff]  ;;  %v298_v7 = vld [vmem:[#allocation7 + $0x40] sm:$0xff]  ;;  %s442_s6 = sshll.u32 %s289_s9, 4  ;;  %s444_s23 = sshll.u32 %s440_s30, 4  ;;  %s443_s6 = int_to_ptr.vmem [resolvable:$true] %s442_s6  ;;  %s445_s23 = int_to_ptr.hbm [resolvable:$true] %s444_s23 }
  0x38   : > { %v297_v8 = vld [vmem:[#allocation7 + $0x38] sm:$0xff]  ;;  %v296_v10 = vld [vmem:[#allocation7 + $0x30] sm:$0xff]  ;;  %v295_v12 = vld [vmem:[#allocation7 + $0x28] sm:$0xff]  ;;  %s429_s22 = scalar_lea.sflag [#allocation4], %s977_s29  ;;  %s767_s14 = sshra.s32 %s445_s23, 4  ;;  %s768_s14 = int_to_ptr.hbm [resolvable:$true] %s767_s14 }
  0x39   : > { %v333_v9 = vld [vmem:[%s991_s11 + $0x8] sm:$0xff]  ;;  %v332_v11 = vld [vmem:[%s991_s11] sm:$0xff]  ;;  %s769_s24 = scalar_lea.hbm %s768_s14, 8  ;;  %s773_s17 = scalar_lea.hbm %s1054_s4, 16 }
  0x3a   : > { %335 = vmatpush.xpose.msra.mxu1 %v304_v1  ;;  %312 = vmatpush.xpose.msra.mxu0 %v304_v1  ;;  %v294_v13 = vld [vmem:[#allocation7 + $0x20] sm:$0xff]  ;;  %v293_v14 = vld [vmem:[#allocation7 + $0x18] sm:$0xff]  ;;  %v292_v15 = vld [vmem:[#allocation7 + $0x10] sm:$0xff]  ;;  %p770_p1 = scmp.ne.s32.totalorder %s768_s14, %s769_s24  ;;  %p774_p10 = scmp.lt.s32.totalorder %s768_s14, %s1054_s4 }
  0x3b   : > { %421 = vmatpush.msra.mxu3 %v333_v9  ;;  %v291_v16 = vld [vmem:[#allocation7 + $0x8] sm:$0xff]  ;;  %v290_v17 = vld [vmem:[#allocation7] sm:$0xff]  ;;  %v307_v18 = vld [vmem:[%s983_s28] sm:$0xff]  ;;  %p775_p11 = scmp.lt.s32.totalorder %s773_s17, %s769_s24 }
  0x3c   : > { %v658_v20 = vld [vmem:[%s1053_s3] ss:$0 sm:$0xff]  ;;  %p771_p3 = pnand %p770_p1, %p947_p4 }
  0x3d   : > { %422 = vmatpush.msra.mxu3 %v332_v11  ;;  %p776_p12 = por %p775_p11, %p774_p10 }
  0x3e   : > { %336 = vmatpush.xpose.msra.mxu1 %v303_v2  ;;  %313 = vmatpush.xpose.msra.mxu0 %v303_v2  ;;  %p772_p9 = pneg %p771_p3 }
  0x40   : > { %p777_p13 = pnand %p776_p12, %p772_p9 }
  0x42   : > { %337 = vmatpush.xpose.msra.mxu1 %v302_v3  ;;  %314 = vmatpush.xpose.msra.mxu0 %v302_v3 }
  0x46   : > { %338 = vmatpush.xpose.msra.mxu1 %v301_v4  ;;  %315 = vmatpush.xpose.msra.mxu0 %v301_v4 }
  0x4a   : > { %339 = vmatpush.xpose.msra.mxu1 %v300_v5  ;;  %316 = vmatpush.xpose.msra.mxu0 %v300_v5 }
  0x4e   : > { %340 = vmatpush.xpose.msra.mxu1 %v299_v6  ;;  %317 = vmatpush.xpose.msra.mxu0 %v299_v6 }
  0x52   : > { %341 = vmatpush.xpose.msra.mxu1 %v298_v7  ;;  %318 = vmatpush.xpose.msra.mxu0 %v298_v7 }
  0x56   : > { %342 = vmatpush.xpose.msra.mxu1 %v297_v8  ;;  %319 = vmatpush.xpose.msra.mxu0 %v297_v8 }
  0x5a   : > { %343 = vmatpush.xpose.msra.mxu1 %v296_v10  ;;  %320 = vmatpush.xpose.msra.mxu0 %v296_v10 }
  0x5e   : > { %344 = vmatpush.xpose.msra.mxu1 %v295_v12  ;;  %321 = vmatpush.xpose.msra.mxu0 %v295_v12 }
  0x62   : > { %345 = vmatpush.xpose.msra.mxu1 %v294_v13  ;;  %322 = vmatpush.xpose.msra.mxu0 %v294_v13 }
  0x66   : > { %346 = vmatpush.xpose.msra.mxu1 %v293_v14  ;;  %323 = vmatpush.xpose.msra.mxu0 %v293_v14 }
  0x6a   : > { %347 = vmatpush.xpose.msra.mxu1 %v292_v15  ;;  %324 = vmatpush.xpose.msra.mxu0 %v292_v15 }
  0x6e   : > { %348 = vmatpush.xpose.msra.mxu1 %v291_v16  ;;  %325 = vmatpush.xpose.msra.mxu0 %v291_v16 }
  0x72   : > { %349 = vmatpush.xpose.msra.mxu1 %v290_v17  ;;  %326 = vmatpush.xpose.msra.mxu0 %v290_v17 }
  0x75   : > { %350 = vmatmul.f32.vlgmr.msra.gmra.mxu1 %v332_v11  ;;  %327 = vmatmul.f32.vlgmr.msra.gmra.mxu0 %v307_v18 }
  0x7d   : > { %353 = vmatmul.f32.gmra.mxu1 %v333_v9 }
  0xf2   : > { %v351_v19 = vpop.f32.mrf.mxu1  ;;  %v328_v23 = vpop.f32.mrf.mxu0 }
  0xf3   : > { %v352_v24 = vadd.f32 %v658_v20, %v351_v19  ;;  %v329_v26 = vadd.f32 %v658_v20, %v328_v23 }
  0xf5   : > { %v357_v27 = vmax.f32 %v352_v24, 0.0  ;;  %v331_v28 = vmax.f32 %v329_v26, 0.0 }
  0xfa   : > { %v354_v21 = vpop.f32.mrf.mxu1 }
  0xfb   : > { %v355_v22 = vadd.f32 %v658_v20, %v354_v21 }
  0xfd   : > { %v358_v25 = vmax.f32 %v355_v22, 0.0 }
  0xff   : > { %373 = vmatpush.xpose.msra.mxu2 %v358_v25 }
 0x103   : > { %374 = vmatpush.xpose.msra.mxu2 %v357_v27 }
 0x106   : > { %375 = vmatmul.f32.vlgmr.msra.gmra.mxu2 %v331_v28 }
 0x189   : > { %v376_v29 = vpop.f32.mrf.mxu2 }
 0x18a   : > { %v380_v30 = vsel %vm379_vm0, %v376_v29, -inf }
 0x18b   : > { %381 = vmax.xlane.f32.xlu0 %v380_v30 }
 0x1fe   : > { %v382_v31 = vpop.xlane.xlu0 %381 }
 0x1ff   : > { %v383_v32 = vsub.f32 %v376_v29, %v382_v31 }
 0x201   : > { %v384_v33 = vmul.f32 1.442695, %v383_v32 }
 0x203   : > { %659 = vpow2.f32 %v384_v33 }
 0x209   : > { %v660_v34 = vpop.eup %659 }
 0x20a   : > { %v386_v35 = vsel %vm379_vm0, %v660_v34, 0.0 }
 0x20b   : > { %387 = vadd.xlane.f32.xlu0 %v386_v35 }
 0x27e   : > { %v388_v36 = vpop.xlane.xlu0 %387 }
 0x27f   : > { %661 = vrcp.f32 %v388_v36  ;;  %v400_v40 = vand.u32 2147483648, %v388_v36  ;;  %v398_v42 = vand.u32 2147483647, %v388_v36  ;;  %vm394_vm2 = vweird.f32 %v388_v36 }
 0x281   : > { %v401_v44 = vor.u32 1.1754944e-38, %v400_v40  ;;  %vm399_vm4 = vcmp.eq.f32.partialorder %v398_v42, 8.507059e+37 }
 0x285   : > { %v662_v37 = vpop.eup %661 }
 0x286   : > { %v390_v38 = vmul.f32 %v662_v37, %v388_v36  ;;  %vm395_vm1 = vweird.f32 %v662_v37 }
 0x287   : > { %vm396_vm3 = vmor %vm394_vm2, %vm395_vm1 }
 0x288   : > { %v391_v39 = vsub.f32 1.0, %v390_v38 }
 0x28a   : > { %v392_v41 = vmul.f32 %v662_v37, %v391_v39 }
 0x28c   : > { %v393_v43 = vadd.f32 %v662_v37, %v392_v41 }
 0x28e   : > { %v397_v45 = vsel %vm396_vm3, %v662_v37, %v393_v43 }
 0x28f   : > { %v402_v46 = vsel %vm399_vm4, %v401_v44, %v397_v45 }
 0x290   : > { %v403_v47 = vmul.f32 %v660_v34, %v402_v46 }
 0x292   : > { %572 = vmatmul.msk.f32.vlgmr.msra.gmra.mxu3 %vm379_vm0, %v403_v47 }
 0x315   : > { %v424_v48 = vpop.f32.mrf.mxu3 }
 0x316   : > { %427 = vst [vmem:[%s289_s9] sm:$0xff] %v424_v48 }
 0x317   : > { %780 = shalt.err (!%p777_p13)
}
 0x318   : > { %586 = dma.vmem_to_hbm [thread:$0]  (%p947_p4), %s443_s6, 128, %s445_s23, %s429_s22  }
 0x319 PF: > { %s456_s25 = sand.u32 1, %s823_s15   ;;  %p600_p0 = pnand %p561_p6, %p955_p7 }
 0x31a   : > { %s457_s5 = scalar_lea.sflag [#allocation4], %s456_s25 }
 0x31b   : > { %p601_p2 = pneg %p600_p0 }
 0x31d   : > { %818 = dma.done.wait (%p601_p2), %s457_s5, 128  }
 0x31e   : > { %820 = vsyncadd (%p601_p2), %s457_s5, 4294967168  ;;  %s23_s20 = sadd.s32 1, %s843_s20   ;;  %s1074_s7 = sld [smem:[#allocation13_spill]] }
 0x31f   : > { %p20_p5 = scmp.ge.s32.totalorder %s23_s20, 4   ;;  %s1075_s17 = sld [smem:[#allocation15_spill]] }
 0x320   : > { %s1076_s10 = sld [smem:[#allocation14_spill]]  ;;  %s1077_s15 = smov %s827_s16 }
 0x321   : > { %s1079_s18 = smov %s839_s19 }
 0x322   :  { %22 = sbr.rel (!%p20_p5) target bundleno = 10 (0xa), region = 98 }
 0x324   : > { %s1078_s16 = smov %s1074_s7 }
 0x326   : > { %s1080_s19 = smov %s1076_s10 }
 0x327   :  { %463 = vsyncpa [#allocation3], 1 }
 0x328   :  { %465 = vsyncpa [#allocation3 + $0x1], 1 }
 0x329   :  { %466 = vsyncpa [#allocation6], 1 }
 0x32a   :  { %468 = vsyncpa [#allocation6 + $0x1], 1 }
 0x32b   :  { %469 = vsyncpa [#allocation4], 1 }
 0x32c   :  { %471 = vsyncpa [#allocation4 + $0x1], 1 }

</bundles_post_ra>
